<compile_context>
chip_gen: v7x
topology: tpu7x:2x2x1
jax: 0.10.0
libtpu: 0.0.40
codegen_flags: <defaults>
</compile_context>

<pallas_src>
import jax
import jax.numpy as jnp
from jax.experimental import pallas as pl
from jax.experimental.pallas import tpu as pltpu

# ---------------- model sizes (small, TPU-friendly) ----------------
B = 4          # batch
B_PAD = 8      # padded batch (full sublane group)
S = 8          # encoder sequence length
E = 32         # word embedding dim
H = 32         # hidden dim
V = 16         # word (output vocab) size
V_PAD = 128    # lane-dense padded vocab width for the logits store
N_LAYERS = 1   # decode_layers (GRU); stacking more layers would just chain more cells

NEG_BIG = -1e30


def _vmem():
    return pl.BlockSpec(memory_space=pltpu.MemorySpace.VMEM)


# ===================== fused Pallas kernel =====================

def decoder_kernel(tok_ref, h_ref, enc_ref, embed_ref,
                   wa_h_ref, wa_e_ref, ba_ref, v_ref,
                   w_ih_ref, w_hh_ref, b_i_ref, b_h_ref,
                   w_out_ref, b_out_ref,
                   logp_ref, hnew_ref, attn_ref):
    """Fused Decoder.forward: embed -> attention -> GRU step -> out + log_softmax."""
    h = h_ref[...]                                               # (Bp, H)

    # ---- embedding lookup as a one-hot matmul (gather-free, MXU friendly) ----
    tok = tok_ref[...]                                           # (Bp, 1) int32
    vocab_iota = jax.lax.broadcasted_iota(jnp.int32, (B_PAD, V), 1)
    onehot = (vocab_iota == tok).astype(jnp.float32)             # (Bp, V)
    emb = jnp.dot(onehot, embed_ref[...],
                  preferred_element_type=jnp.float32)            # (Bp, E)
    # TODO(synk): decode_dropout is identity at inference; training-mode dropout not implemented.

    # ---- additive attention: score[b,s] = v . tanh(W_a [h_b ; enc_{b,s}] + b_a) ----
    # (the reference's src_len masking is commented out, so no masking here)
    h_part = jnp.dot(h, wa_h_ref[...],
                     preferred_element_type=jnp.float32) + ba_ref[...]   # (Bp, H)
    vvec = v_ref[...]                                            # (1, H)
    lane = jax.lax.broadcasted_iota(jnp.int32, (B_PAD, S), 1)
    scores = jnp.zeros((B_PAD, S), jnp.float32)
    enc_slabs = []
    for s in range(S):                                           # unrolled, rank-2 slabs only
        enc_s = enc_ref[s]                                       # (Bp, H)
        enc_slabs.append(enc_s)
        e_s = jnp.dot(enc_s, wa_e_ref[...], preferred_element_type=jnp.float32)
        energy_s = jnp.tanh(h_part + e_s)                        # (Bp, H)
        col = jnp.sum(energy_s * vvec, axis=-1, keepdims=True)   # (Bp, 1)
        scores = scores + jnp.where(lane == s, col, 0.0)

    scores = scores - jnp.max(scores, axis=-1, keepdims=True)
    p = jnp.exp(scores)
    inv_den = pl.reciprocal(jnp.sum(p, axis=-1, keepdims=True), approx=True)
    attn = p * inv_den                                           # (Bp, S)

    ctx = jnp.zeros((B_PAD, H), jnp.float32)
    for s in range(S):
        ctx = ctx + attn[:, s:s + 1] * enc_slabs[s]              # (Bp, H)

    # ---- single-step GRU (PyTorch gate order r, z, n), per-gate matmuls ----
    x = jnp.concatenate([emb, ctx], axis=-1)                     # (Bp, E+H) = rnn_input
    gi_r = jnp.dot(x, w_ih_ref[0], preferred_element_type=jnp.float32) + b_i_ref[0:1, :]
    gi_z = jnp.dot(x, w_ih_ref[1], preferred_element_type=jnp.float32) + b_i_ref[1:2, :]
    gi_n = jnp.dot(x, w_ih_ref[2], preferred_element_type=jnp.float32) + b_i_ref[2:3, :]
    gh_r = jnp.dot(h, w_hh_ref[0], preferred_element_type=jnp.float32) + b_h_ref[0:1, :]
    gh_z = jnp.dot(h, w_hh_ref[1], preferred_element_type=jnp.float32) + b_h_ref[1:2, :]
    gh_n = jnp.dot(h, w_hh_ref[2], preferred_element_type=jnp.float32) + b_h_ref[2:3, :]
    r = jax.nn.sigmoid(gi_r + gh_r)
    z = jax.nn.sigmoid(gi_z + gh_z)
    n = jnp.tanh(gi_n + r * gh_n)
    h_new = (1.0 - z) * n + z * h                                # (Bp, H)

    # ---- output head: Linear([h_new ; ctx]) then log_softmax, lane-dense at 128 ----
    ho = jnp.concatenate([h_new, ctx], axis=-1)                  # (Bp, 2H)
    logits = jnp.dot(ho, w_out_ref[...],
                     preferred_element_type=jnp.float32) + b_out_ref[...]  # (Bp, 128)
    m = jnp.max(logits, axis=-1, keepdims=True)
    sh = logits - m
    lse = jnp.log(jnp.sum(jnp.exp(sh), axis=-1, keepdims=True))
    logp_ref[...] = sh - lse                                     # dense 128-wide store
    hnew_ref[...] = h_new
    attn_ref[...] = attn


# ===================== wrapper =====================

@jax.jit
def decoder_forward(tokens, last_hidden, encoder_outputs, src_len, params):
    """Mirrors Decoder.forward(input, last_hidden, encoder_outputs, src_len)."""
    del src_len  # reference masks with src_len only in commented-out code (no-op)
    b = tokens.shape[0]

    # pad batch to a full sublane group; lay encoder outputs out time-major
    tok_p = jnp.zeros((B_PAD, 1), jnp.int32).at[:b, 0].set(tokens.astype(jnp.int32))
    h_p = jnp.zeros((B_PAD, H), jnp.float32).at[:b].set(last_hidden[-1])
    enc_p = jnp.zeros((S, B_PAD, H), jnp.float32).at[:, :b].set(
        jnp.transpose(encoder_outputs, (1, 0, 2)))

    logp, h_new, attn = pl.pallas_call(
        decoder_kernel,
        out_shape=(jax.ShapeDtypeStruct((B_PAD, V_PAD), jnp.float32),
                   jax.ShapeDtypeStruct((B_PAD, H), jnp.float32),
                   jax.ShapeDtypeStruct((B_PAD, S), jnp.float32)),
        in_specs=[_vmem()] * 14,
        out_specs=(_vmem(), _vmem(), _vmem()),
    )(tok_p, h_p, enc_p,
      params['embed'],
      params['wa_h'], params['wa_e'], params['ba'], params['v'],
      params['w_ih'], params['w_hh'], params['b_i'], params['b_h'],
      params['w_out_pad'], params['b_out_pad'])

    output = logp[:b, :V]                       # (B, V) log-probs
    hidden = h_new[:b][None, :, :]              # (1, B, H)   (decode_layers = 1)
    attn_weights = attn[:b][:, None, :]         # (B, 1, S)
    return output, hidden, attn_weights


def init_params(key):
    ks = jax.random.split(key, 8)
    sc = 0.1
    stdv = 1.0 / (H ** 0.5)
    w_out = sc * jax.random.normal(ks[6], (2 * H, V), jnp.float32)
    w_out_pad = jnp.zeros((2 * H, V_PAD), jnp.float32).at[:, :V].set(w_out)
    b_out_pad = jnp.full((1, V_PAD), NEG_BIG, jnp.float32).at[0, :V].set(0.0)
    return {
        # embedding table (nn.Embedding.from_pretrained)
        'embed': sc * jax.random.normal(ks[0], (V, E), jnp.float32),
        # Attention: Linear(2H, H) stored transposed and split into [hidden ; encoder] halves
        'wa_h':  sc * jax.random.normal(ks[1], (H, H), jnp.float32),
        'wa_e':  sc * jax.random.normal(ks[2], (H, H), jnp.float32),
        'ba':    jnp.zeros((1, H), jnp.float32),
        'v':     jax.random.uniform(ks[3], (1, H), jnp.float32, -stdv, stdv),
        # GRU (decode_layers = 1): per-gate stacked weights, gate order (r, z, n)
        'w_ih':  sc * jax.random.normal(ks[4], (3, E + H, H), jnp.float32),
        'w_hh':  sc * jax.random.normal(ks[5], (3, H, H), jnp.float32),
        'b_i':   jnp.zeros((3, H), jnp.float32),
        'b_h':   jnp.zeros((3, H), jnp.float32),
        # output head, pre-padded to a lane-dense 128-wide store
        'w_out_pad': w_out_pad,
        'b_out_pad': b_out_pad,
    }


if __name__ == "__main__":
    key = jax.random.PRNGKey(0)
    kp, kenc, kh, ktok = jax.random.split(key, 4)
    params = init_params(kp)

    encoder_outputs = 0.1 * jax.random.normal(kenc, (B, S, H), jnp.float32)
    last_hidden = 0.1 * jax.random.normal(kh, (N_LAYERS, B, H), jnp.float32)
    tokens = jax.random.randint(ktok, (B,), 0, V, dtype=jnp.int32)
    src_len = jnp.array([S, S - 2, S - 3, S], dtype=jnp.int32)   # unused (masking is commented out in the reference)

    output, hidden, attn_weights = decoder_forward(
        tokens, last_hidden, encoder_outputs, src_len, params)
    output, hidden, attn_weights = jax.block_until_ready((output, hidden, attn_weights))

    assert output.shape == (B, V)
    assert hidden.shape == (N_LAYERS, B, H)
    assert attn_weights.shape == (B, 1, S)
    assert bool(jnp.all(jnp.isfinite(output)))
    assert bool(jnp.all(jnp.isfinite(hidden)))
    # log-probs exponentiate to a distribution; attention rows sum to ~1 (approx reciprocal)
    assert bool(jnp.allclose(jnp.sum(jnp.exp(output), axis=-1), 1.0, atol=1e-3))
    assert bool(jnp.allclose(jnp.sum(attn_weights, axis=-1), 1.0, atol=5e-3))
    print("KERNEL_OK")
</pallas_src>

<mosaic_0001>
module attributes {stable_mosaic.version = 11 : i64} {
  func.func @decoder_kernel(%arg0: memref<8x1xi32, #tpu.memory_space<vmem>>, %arg1: memref<8x32xf32, #tpu.memory_space<vmem>>, %arg2: memref<8x8x32xf32, #tpu.memory_space<vmem>>, %arg3: memref<16x32xf32, #tpu.memory_space<vmem>>, %arg4: memref<32x32xf32, #tpu.memory_space<vmem>>, %arg5: memref<32x32xf32, #tpu.memory_space<vmem>>, %arg6: memref<1x32xf32, #tpu.memory_space<vmem>>, %arg7: memref<1x32xf32, #tpu.memory_space<vmem>>, %arg8: memref<3x64x32xf32, #tpu.memory_space<vmem>>, %arg9: memref<3x32x32xf32, #tpu.memory_space<vmem>>, %arg10: memref<3x32xf32, #tpu.memory_space<vmem>>, %arg11: memref<3x32xf32, #tpu.memory_space<vmem>>, %arg12: memref<64x128xf32, #tpu.memory_space<vmem>>, %arg13: memref<1x128xf32, #tpu.memory_space<vmem>>, %arg14: memref<8x128xf32, #tpu.memory_space<vmem>>, %arg15: memref<8x32xf32, #tpu.memory_space<vmem>>, %arg16: memref<8x8xf32, #tpu.memory_space<vmem>>) attributes {dimension_semantics = [], scalar_prefetch = 0 : i64, scratch_operands = 0 : i64, tpu.core_type = #tpu.core_type<tc>} {
    %c0 = arith.constant 0 : index
    %c0_0 = arith.constant 0 : index
    %0 = vector.load %arg1[%c0, %c0_0] : memref<8x32xf32, #tpu.memory_space<vmem>>, vector<8x32xf32>
    %c0_1 = arith.constant 0 : index
    %c0_2 = arith.constant 0 : index
    %1 = vector.load %arg0[%c0_1, %c0_2] : memref<8x1xi32, #tpu.memory_space<vmem>>, vector<8x1xi32>
    %2 = tpu.iota {dimensions = array<i32: 1>} : vector<8x16xi32>
    %3 = vector.broadcast %1 : vector<8x1xi32> to vector<8x16xi32>
    %4 = arith.cmpi eq, %2, %3 : vector<8x16xi32>
    %5 = arith.extui %4 : vector<8x16xi1> to vector<8x16xi32>
    %6 = arith.sitofp %5 : vector<8x16xi32> to vector<8x16xf32>
    %c0_3 = arith.constant 0 : index
    %c0_4 = arith.constant 0 : index
    %7 = vector.load %arg3[%c0_3, %c0_4] : memref<16x32xf32, #tpu.memory_space<vmem>>, vector<16x32xf32>
    %cst = arith.constant dense<0.000000e+00> : vector<8x32xf32>
    %8 = tpu.matmul %6, %7, %cst {dimension_numbers = #tpu.dot_dimension_numbers<[1], [0], [0], [1], [0, 0, 1, 1], [], []>} : vector<8x16xf32>, vector<16x32xf32>, vector<8x32xf32> -> vector<8x32xf32>
    %c0_5 = arith.constant 0 : index
    %c0_6 = arith.constant 0 : index
    %9 = vector.load %arg4[%c0_5, %c0_6] : memref<32x32xf32, #tpu.memory_space<vmem>>, vector<32x32xf32>
    %cst_7 = arith.constant dense<0.000000e+00> : vector<8x32xf32>
    %10 = tpu.matmul %0, %9, %cst_7 {dimension_numbers = #tpu.dot_dimension_numbers<[1], [0], [0], [1], [0, 0, 1, 1], [], []>} : vector<8x32xf32>, vector<32x32xf32>, vector<8x32xf32> -> vector<8x32xf32>
    %c0_8 = arith.constant 0 : index
    %c0_9 = arith.constant 0 : index
    %11 = vector.load %arg6[%c0_8, %c0_9] : memref<1x32xf32, #tpu.memory_space<vmem>>, vector<1x32xf32>
    %12 = vector.broadcast %11 : vector<1x32xf32> to vector<8x32xf32>
    %13 = arith.addf %10, %12 : vector<8x32xf32>
    %c0_10 = arith.constant 0 : index
    %c0_11 = arith.constant 0 : index
    %14 = vector.load %arg7[%c0_10, %c0_11] : memref<1x32xf32, #tpu.memory_space<vmem>>, vector<1x32xf32>
    %15 = tpu.iota {dimensions = array<i32: 1>} : vector<8x8xi32>
    %cst_12 = arith.constant 0.000000e+00 : f32
    %16 = vector.broadcast %cst_12 : f32 to vector<8x8xf32>
    %c0_13 = arith.constant 0 : index
    %c0_14 = arith.constant 0 : index
    %c0_15 = arith.constant 0 : index
    %17 = vector.load %arg2[%c0_13, %c0_14, %c0_15] : memref<8x8x32xf32, #tpu.memory_space<vmem>>, vector<1x8x32xf32>
    %18 = vector.shape_cast %17 : vector<1x8x32xf32> to vector<8x32xf32>
    %c0_16 = arith.constant 0 : index
    %c0_17 = arith.constant 0 : index
    %19 = vector.load %arg5[%c0_16, %c0_17] : memref<32x32xf32, #tpu.memory_space<vmem>>, vector<32x32xf32>
    %cst_18 = arith.constant dense<0.000000e+00> : vector<8x32xf32>
    %20 = tpu.matmul %18, %19, %cst_18 {dimension_numbers = #tpu.dot_dimension_numbers<[1], [0], [0], [1], [0, 0, 1, 1], [], []>} : vector<8x32xf32>, vector<32x32xf32>, vector<8x32xf32> -> vector<8x32xf32>
    %21 = arith.addf %13, %20 : vector<8x32xf32>
    %22 = math.tanh %21 : vector<8x32xf32>
    %23 = vector.broadcast %14 : vector<1x32xf32> to vector<8x32xf32>
    %24 = arith.mulf %22, %23 : vector<8x32xf32>
    %cst_19 = arith.constant dense<0.000000e+00> : vector<8xf32>
    %25 = vector.multi_reduction <add>, %24, %cst_19 [1] : vector<8x32xf32> to vector<8xf32>
    %26 = vector.shape_cast %25 : vector<8xf32> to vector<8x1xf32>
    %c0_i32 = arith.constant 0 : i32
    %27 = vector.broadcast %c0_i32 : i32 to vector<8x8xi32>
    %28 = arith.cmpi eq, %15, %27 : vector<8x8xi32>
    %cst_20 = arith.constant 0.000000e+00 : f32
    %29 = vector.shape_cast %26 : vector<8x1xf32> to vector<8x1xf32>
    %30 = vector.broadcast %29 : vector<8x1xf32> to vector<8x8xf32>
    %31 = vector.broadcast %cst_20 : f32 to vector<8x8xf32>
    %32 = arith.select %28, %30, %31 : vector<8x8xi1>, vector<8x8xf32>
    %33 = arith.addf %16, %32 : vector<8x8xf32>
    %c1 = arith.constant 1 : index
    %c0_21 = arith.constant 0 : index
    %c0_22 = arith.constant 0 : index
    %34 = vector.load %arg2[%c1, %c0_21, %c0_22] : memref<8x8x32xf32, #tpu.memory_space<vmem>>, vector<1x8x32xf32>
    %35 = vector.shape_cast %34 : vector<1x8x32xf32> to vector<8x32xf32>
    %c0_23 = arith.constant 0 : index
    %c0_24 = arith.constant 0 : index
    %36 = vector.load %arg5[%c0_23, %c0_24] : memref<32x32xf32, #tpu.memory_space<vmem>>, vector<32x32xf32>
    %cst_25 = arith.constant dense<0.000000e+00> : vector<8x32xf32>
    %37 = tpu.matmul %35, %36, %cst_25 {dimension_numbers = #tpu.dot_dimension_numbers<[1], [0], [0], [1], [0, 0, 1, 1], [], []>} : vector<8x32xf32>, vector<32x32xf32>, vector<8x32xf32> -> vector<8x32xf32>
    %38 = arith.addf %13, %37 : vector<8x32xf32>
    %39 = math.tanh %38 : vector<8x32xf32>
    %40 = vector.broadcast %14 : vector<1x32xf32> to vector<8x32xf32>
    %41 = arith.mulf %39, %40 : vector<8x32xf32>
    %cst_26 = arith.constant dense<0.000000e+00> : vector<8xf32>
    %42 = vector.multi_reduction <add>, %41, %cst_26 [1] : vector<8x32xf32> to vector<8xf32>
    %43 = vector.shape_cast %42 : vector<8xf32> to vector<8x1xf32>
    %c1_i32 = arith.constant 1 : i32
    %44 = vector.broadcast %c1_i32 : i32 to vector<8x8xi32>
    %45 = arith.cmpi eq, %15, %44 : vector<8x8xi32>
    %cst_27 = arith.constant 0.000000e+00 : f32
    %46 = vector.shape_cast %43 : vector<8x1xf32> to vector<8x1xf32>
    %47 = vector.broadcast %46 : vector<8x1xf32> to vector<8x8xf32>
    %48 = vector.broadcast %cst_27 : f32 to vector<8x8xf32>
    %49 = arith.select %45, %47, %48 : vector<8x8xi1>, vector<8x8xf32>
    %50 = arith.addf %33, %49 : vector<8x8xf32>
    %c2 = arith.constant 2 : index
    %c0_28 = arith.constant 0 : index
    %c0_29 = arith.constant 0 : index
    %51 = vector.load %arg2[%c2, %c0_28, %c0_29] : memref<8x8x32xf32, #tpu.memory_space<vmem>>, vector<1x8x32xf32>
    %52 = vector.shape_cast %51 : vector<1x8x32xf32> to vector<8x32xf32>
    %c0_30 = arith.constant 0 : index
    %c0_31 = arith.constant 0 : index
    %53 = vector.load %arg5[%c0_30, %c0_31] : memref<32x32xf32, #tpu.memory_space<vmem>>, vector<32x32xf32>
    %cst_32 = arith.constant dense<0.000000e+00> : vector<8x32xf32>
    %54 = tpu.matmul %52, %53, %cst_32 {dimension_numbers = #tpu.dot_dimension_numbers<[1], [0], [0], [1], [0, 0, 1, 1], [], []>} : vector<8x32xf32>, vector<32x32xf32>, vector<8x32xf32> -> vector<8x32xf32>
    %55 = arith.addf %13, %54 : vector<8x32xf32>
    %56 = math.tanh %55 : vector<8x32xf32>
    %57 = vector.broadcast %14 : vector<1x32xf32> to vector<8x32xf32>
    %58 = arith.mulf %56, %57 : vector<8x32xf32>
    %cst_33 = arith.constant dense<0.000000e+00> : vector<8xf32>
    %59 = vector.multi_reduction <add>, %58, %cst_33 [1] : vector<8x32xf32> to vector<8xf32>
    %60 = vector.shape_cast %59 : vector<8xf32> to vector<8x1xf32>
    %c2_i32 = arith.constant 2 : i32
    %61 = vector.broadcast %c2_i32 : i32 to vector<8x8xi32>
    %62 = arith.cmpi eq, %15, %61 : vector<8x8xi32>
    %cst_34 = arith.constant 0.000000e+00 : f32
    %63 = vector.shape_cast %60 : vector<8x1xf32> to vector<8x1xf32>
    %64 = vector.broadcast %63 : vector<8x1xf32> to vector<8x8xf32>
    %65 = vector.broadcast %cst_34 : f32 to vector<8x8xf32>
    %66 = arith.select %62, %64, %65 : vector<8x8xi1>, vector<8x8xf32>
    %67 = arith.addf %50, %66 : vector<8x8xf32>
    %c3 = arith.constant 3 : index
    %c0_35 = arith.constant 0 : index
    %c0_36 = arith.constant 0 : index
    %68 = vector.load %arg2[%c3, %c0_35, %c0_36] : memref<8x8x32xf32, #tpu.memory_space<vmem>>, vector<1x8x32xf32>
    %69 = vector.shape_cast %68 : vector<1x8x32xf32> to vector<8x32xf32>
    %c0_37 = arith.constant 0 : index
    %c0_38 = arith.constant 0 : index
    %70 = vector.load %arg5[%c0_37, %c0_38] : memref<32x32xf32, #tpu.memory_space<vmem>>, vector<32x32xf32>
    %cst_39 = arith.constant dense<0.000000e+00> : vector<8x32xf32>
    %71 = tpu.matmul %69, %70, %cst_39 {dimension_numbers = #tpu.dot_dimension_numbers<[1], [0], [0], [1], [0, 0, 1, 1], [], []>} : vector<8x32xf32>, vector<32x32xf32>, vector<8x32xf32> -> vector<8x32xf32>
    %72 = arith.addf %13, %71 : vector<8x32xf32>
    %73 = math.tanh %72 : vector<8x32xf32>
    %74 = vector.broadcast %14 : vector<1x32xf32> to vector<8x32xf32>
    %75 = arith.mulf %73, %74 : vector<8x32xf32>
    %cst_40 = arith.constant dense<0.000000e+00> : vector<8xf32>
    %76 = vector.multi_reduction <add>, %75, %cst_40 [1] : vector<8x32xf32> to vector<8xf32>
    %77 = vector.shape_cast %76 : vector<8xf32> to vector<8x1xf32>
    %c3_i32 = arith.constant 3 : i32
    %78 = vector.broadcast %c3_i32 : i32 to vector<8x8xi32>
    %79 = arith.cmpi eq, %15, %78 : vector<8x8xi32>
    %cst_41 = arith.constant 0.000000e+00 : f32
    %80 = vector.shape_cast %77 : vector<8x1xf32> to vector<8x1xf32>
    %81 = vector.broadcast %80 : vector<8x1xf32> to vector<8x8xf32>
    %82 = vector.broadcast %cst_41 : f32 to vector<8x8xf32>
    %83 = arith.select %79, %81, %82 : vector<8x8xi1>, vector<8x8xf32>
    %84 = arith.addf %67, %83 : vector<8x8xf32>
    %c4 = arith.constant 4 : index
    %c0_42 = arith.constant 0 : index
    %c0_43 = arith.constant 0 : index
    %85 = vector.load %arg2[%c4, %c0_42, %c0_43] : memref<8x8x32xf32, #tpu.memory_space<vmem>>, vector<1x8x32xf32>
    %86 = vector.shape_cast %85 : vector<1x8x32xf32> to vector<8x32xf32>
    %c0_44 = arith.constant 0 : index
    %c0_45 = arith.constant 0 : index
    %87 = vector.load %arg5[%c0_44, %c0_45] : memref<32x32xf32, #tpu.memory_space<vmem>>, vector<32x32xf32>
    %cst_46 = arith.constant dense<0.000000e+00> : vector<8x32xf32>
    %88 = tpu.matmul %86, %87, %cst_46 {dimension_numbers = #tpu.dot_dimension_numbers<[1], [0], [0], [1], [0, 0, 1, 1], [], []>} : vector<8x32xf32>, vector<32x32xf32>, vector<8x32xf32> -> vector<8x32xf32>
    %89 = arith.addf %13, %88 : vector<8x32xf32>
    %90 = math.tanh %89 : vector<8x32xf32>
    %91 = vector.broadcast %14 : vector<1x32xf32> to vector<8x32xf32>
    %92 = arith.mulf %90, %91 : vector<8x32xf32>
    %cst_47 = arith.constant dense<0.000000e+00> : vector<8xf32>
    %93 = vector.multi_reduction <add>, %92, %cst_47 [1] : vector<8x32xf32> to vector<8xf32>
    %94 = vector.shape_cast %93 : vector<8xf32> to vector<8x1xf32>
    %c4_i32 = arith.constant 4 : i32
    %95 = vector.broadcast %c4_i32 : i32 to vector<8x8xi32>
    %96 = arith.cmpi eq, %15, %95 : vector<8x8xi32>
    %cst_48 = arith.constant 0.000000e+00 : f32
    %97 = vector.shape_cast %94 : vector<8x1xf32> to vector<8x1xf32>
    %98 = vector.broadcast %97 : vector<8x1xf32> to vector<8x8xf32>
    %99 = vector.broadcast %cst_48 : f32 to vector<8x8xf32>
    %100 = arith.select %96, %98, %99 : vector<8x8xi1>, vector<8x8xf32>
    %101 = arith.addf %84, %100 : vector<8x8xf32>
    %c5 = arith.constant 5 : index
    %c0_49 = arith.constant 0 : index
    %c0_50 = arith.constant 0 : index
    %102 = vector.load %arg2[%c5, %c0_49, %c0_50] : memref<8x8x32xf32, #tpu.memory_space<vmem>>, vector<1x8x32xf32>
    %103 = vector.shape_cast %102 : vector<1x8x32xf32> to vector<8x32xf32>
    %c0_51 = arith.constant 0 : index
    %c0_52 = arith.constant 0 : index
    %104 = vector.load %arg5[%c0_51, %c0_52] : memref<32x32xf32, #tpu.memory_space<vmem>>, vector<32x32xf32>
    %cst_53 = arith.constant dense<0.000000e+00> : vector<8x32xf32>
    %105 = tpu.matmul %103, %104, %cst_53 {dimension_numbers = #tpu.dot_dimension_numbers<[1], [0], [0], [1], [0, 0, 1, 1], [], []>} : vector<8x32xf32>, vector<32x32xf32>, vector<8x32xf32> -> vector<8x32xf32>
    %106 = arith.addf %13, %105 : vector<8x32xf32>
    %107 = math.tanh %106 : vector<8x32xf32>
    %108 = vector.broadcast %14 : vector<1x32xf32> to vector<8x32xf32>
    %109 = arith.mulf %107, %108 : vector<8x32xf32>
    %cst_54 = arith.constant dense<0.000000e+00> : vector<8xf32>
    %110 = vector.multi_reduction <add>, %109, %cst_54 [1] : vector<8x32xf32> to vector<8xf32>
    %111 = vector.shape_cast %110 : vector<8xf32> to vector<8x1xf32>
    %c5_i32 = arith.constant 5 : i32
    %112 = vector.broadcast %c5_i32 : i32 to vector<8x8xi32>
    %113 = arith.cmpi eq, %15, %112 : vector<8x8xi32>
    %cst_55 = arith.constant 0.000000e+00 : f32
    %114 = vector.shape_cast %111 : vector<8x1xf32> to vector<8x1xf32>
    %115 = vector.broadcast %114 : vector<8x1xf32> to vector<8x8xf32>
    %116 = vector.broadcast %cst_55 : f32 to vector<8x8xf32>
    %117 = arith.select %113, %115, %116 : vector<8x8xi1>, vector<8x8xf32>
    %118 = arith.addf %101, %117 : vector<8x8xf32>
    %c6 = arith.constant 6 : index
    %c0_56 = arith.constant 0 : index
    %c0_57 = arith.constant 0 : index
    %119 = vector.load %arg2[%c6, %c0_56, %c0_57] : memref<8x8x32xf32, #tpu.memory_space<vmem>>, vector<1x8x32xf32>
    %120 = vector.shape_cast %119 : vector<1x8x32xf32> to vector<8x32xf32>
    %c0_58 = arith.constant 0 : index
    %c0_59 = arith.constant 0 : index
    %121 = vector.load %arg5[%c0_58, %c0_59] : memref<32x32xf32, #tpu.memory_space<vmem>>, vector<32x32xf32>
    %cst_60 = arith.constant dense<0.000000e+00> : vector<8x32xf32>
    %122 = tpu.matmul %120, %121, %cst_60 {dimension_numbers = #tpu.dot_dimension_numbers<[1], [0], [0], [1], [0, 0, 1, 1], [], []>} : vector<8x32xf32>, vector<32x32xf32>, vector<8x32xf32> -> vector<8x32xf32>
    %123 = arith.addf %13, %122 : vector<8x32xf32>
    %124 = math.tanh %123 : vector<8x32xf32>
    %125 = vector.broadcast %14 : vector<1x32xf32> to vector<8x32xf32>
    %126 = arith.mulf %124, %125 : vector<8x32xf32>
    %cst_61 = arith.constant dense<0.000000e+00> : vector<8xf32>
    %127 = vector.multi_reduction <add>, %126, %cst_61 [1] : vector<8x32xf32> to vector<8xf32>
    %128 = vector.shape_cast %127 : vector<8xf32> to vector<8x1xf32>
    %c6_i32 = arith.constant 6 : i32
    %129 = vector.broadcast %c6_i32 : i32 to vector<8x8xi32>
    %130 = arith.cmpi eq, %15, %129 : vector<8x8xi32>
    %cst_62 = arith.constant 0.000000e+00 : f32
    %131 = vector.shape_cast %128 : vector<8x1xf32> to vector<8x1xf32>
    %132 = vector.broadcast %131 : vector<8x1xf32> to vector<8x8xf32>
    %133 = vector.broadcast %cst_62 : f32 to vector<8x8xf32>
    %134 = arith.select %130, %132, %133 : vector<8x8xi1>, vector<8x8xf32>
    %135 = arith.addf %118, %134 : vector<8x8xf32>
    %c7 = arith.constant 7 : index
    %c0_63 = arith.constant 0 : index
    %c0_64 = arith.constant 0 : index
    %136 = vector.load %arg2[%c7, %c0_63, %c0_64] : memref<8x8x32xf32, #tpu.memory_space<vmem>>, vector<1x8x32xf32>
    %137 = vector.shape_cast %136 : vector<1x8x32xf32> to vector<8x32xf32>
    %c0_65 = arith.constant 0 : index
    %c0_66 = arith.constant 0 : index
    %138 = vector.load %arg5[%c0_65, %c0_66] : memref<32x32xf32, #tpu.memory_space<vmem>>, vector<32x32xf32>
    %cst_67 = arith.constant dense<0.000000e+00> : vector<8x32xf32>
    %139 = tpu.matmul %137, %138, %cst_67 {dimension_numbers = #tpu.dot_dimension_numbers<[1], [0], [0], [1], [0, 0, 1, 1], [], []>} : vector<8x32xf32>, vector<32x32xf32>, vector<8x32xf32> -> vector<8x32xf32>
    %140 = arith.addf %13, %139 : vector<8x32xf32>
    %141 = math.tanh %140 : vector<8x32xf32>
    %142 = vector.broadcast %14 : vector<1x32xf32> to vector<8x32xf32>
    %143 = arith.mulf %141, %142 : vector<8x32xf32>
    %cst_68 = arith.constant dense<0.000000e+00> : vector<8xf32>
    %144 = vector.multi_reduction <add>, %143, %cst_68 [1] : vector<8x32xf32> to vector<8xf32>
    %145 = vector.shape_cast %144 : vector<8xf32> to vector<8x1xf32>
    %c7_i32 = arith.constant 7 : i32
    %146 = vector.broadcast %c7_i32 : i32 to vector<8x8xi32>
    %147 = arith.cmpi eq, %15, %146 : vector<8x8xi32>
    %cst_69 = arith.constant 0.000000e+00 : f32
    %148 = vector.shape_cast %145 : vector<8x1xf32> to vector<8x1xf32>
    %149 = vector.broadcast %148 : vector<8x1xf32> to vector<8x8xf32>
    %150 = vector.broadcast %cst_69 : f32 to vector<8x8xf32>
    %151 = arith.select %147, %149, %150 : vector<8x8xi1>, vector<8x8xf32>
    %152 = arith.addf %135, %151 : vector<8x8xf32>
    %cst_70 = arith.constant dense<0xFF800000> : vector<8xf32>
    %153 = vector.multi_reduction <maximumf>, %152, %cst_70 [1] : vector<8x8xf32> to vector<8xf32>
    %154 = vector.shape_cast %153 : vector<8xf32> to vector<8x1xf32>
    %155 = vector.broadcast %154 : vector<8x1xf32> to vector<8x8xf32>
    %156 = arith.subf %152, %155 : vector<8x8xf32>
    %157 = math.exp %156 : vector<8x8xf32>
    %cst_71 = arith.constant dense<0.000000e+00> : vector<8xf32>
    %158 = vector.multi_reduction <add>, %157, %cst_71 [1] : vector<8x8xf32> to vector<8xf32>
    %159 = vector.shape_cast %158 : vector<8xf32> to vector<8x1xf32>
    %160 = tpu.reciprocal %159 {approx = true} : vector<8x1xf32> -> vector<8x1xf32>
    %161 = vector.broadcast %160 : vector<8x1xf32> to vector<8x8xf32>
    %162 = arith.mulf %157, %161 : vector<8x8xf32>
    %cst_72 = arith.constant 0.000000e+00 : f32
    %163 = vector.broadcast %cst_72 : f32 to vector<8x32xf32>
    %164 = vector.extract_strided_slice %162 {offsets = [0, 0], sizes = [8, 1], strides = [1, 1]} : vector<8x8xf32> to vector<8x1xf32>
    %165 = vector.broadcast %164 : vector<8x1xf32> to vector<8x32xf32>
    %166 = arith.mulf %165, %18 : vector<8x32xf32>
    %167 = arith.addf %163, %166 : vector<8x32xf32>
    %168 = vector.extract_strided_slice %162 {offsets = [0, 1], sizes = [8, 1], strides = [1, 1]} : vector<8x8xf32> to vector<8x1xf32>
    %169 = vector.broadcast %168 : vector<8x1xf32> to vector<8x32xf32>
    %170 = arith.mulf %169, %35 : vector<8x32xf32>
    %171 = arith.addf %167, %170 : vector<8x32xf32>
    %172 = vector.extract_strided_slice %162 {offsets = [0, 2], sizes = [8, 1], strides = [1, 1]} : vector<8x8xf32> to vector<8x1xf32>
    %173 = vector.broadcast %172 : vector<8x1xf32> to vector<8x32xf32>
    %174 = arith.mulf %173, %52 : vector<8x32xf32>
    %175 = arith.addf %171, %174 : vector<8x32xf32>
    %176 = vector.extract_strided_slice %162 {offsets = [0, 3], sizes = [8, 1], strides = [1, 1]} : vector<8x8xf32> to vector<8x1xf32>
    %177 = vector.broadcast %176 : vector<8x1xf32> to vector<8x32xf32>
    %178 = arith.mulf %177, %69 : vector<8x32xf32>
    %179 = arith.addf %175, %178 : vector<8x32xf32>
    %180 = vector.extract_strided_slice %162 {offsets = [0, 4], sizes = [8, 1], strides = [1, 1]} : vector<8x8xf32> to vector<8x1xf32>
    %181 = vector.broadcast %180 : vector<8x1xf32> to vector<8x32xf32>
    %182 = arith.mulf %181, %86 : vector<8x32xf32>
    %183 = arith.addf %179, %182 : vector<8x32xf32>
    %184 = vector.extract_strided_slice %162 {offsets = [0, 5], sizes = [8, 1], strides = [1, 1]} : vector<8x8xf32> to vector<8x1xf32>
    %185 = vector.broadcast %184 : vector<8x1xf32> to vector<8x32xf32>
    %186 = arith.mulf %185, %103 : vector<8x32xf32>
    %187 = arith.addf %183, %186 : vector<8x32xf32>
    %188 = vector.extract_strided_slice %162 {offsets = [0, 6], sizes = [8, 1], strides = [1, 1]} : vector<8x8xf32> to vector<8x1xf32>
    %189 = vector.broadcast %188 : vector<8x1xf32> to vector<8x32xf32>
    %190 = arith.mulf %189, %120 : vector<8x32xf32>
    %191 = arith.addf %187, %190 : vector<8x32xf32>
    %192 = vector.extract_strided_slice %162 {offsets = [0, 7], sizes = [8, 1], strides = [1, 1]} : vector<8x8xf32> to vector<8x1xf32>
    %193 = vector.broadcast %192 : vector<8x1xf32> to vector<8x32xf32>
    %194 = arith.mulf %193, %137 : vector<8x32xf32>
    %195 = arith.addf %191, %194 : vector<8x32xf32>
    %196 = tpu.concatenate %8, %195 in 1 : vector<8x32xf32>, vector<8x32xf32> -> vector<8x64xf32>
    %c0_73 = arith.constant 0 : index
    %c0_74 = arith.constant 0 : index
    %c0_75 = arith.constant 0 : index
    %197 = vector.load %arg8[%c0_73, %c0_74, %c0_75] : memref<3x64x32xf32, #tpu.memory_space<vmem>>, vector<1x64x32xf32>
    %198 = vector.shape_cast %197 : vector<1x64x32xf32> to vector<64x32xf32>
    %cst_76 = arith.constant dense<0.000000e+00> : vector<8x32xf32>
    %199 = tpu.matmul %196, %198, %cst_76 {dimension_numbers = #tpu.dot_dimension_numbers<[1], [0], [0], [1], [0, 0, 1, 1], [], []>} : vector<8x64xf32>, vector<64x32xf32>, vector<8x32xf32> -> vector<8x32xf32>
    %c0_77 = arith.constant 0 : index
    %c0_78 = arith.constant 0 : index
    %200 = vector.load %arg10[%c0_77, %c0_78] : memref<3x32xf32, #tpu.memory_space<vmem>>, vector<1x32xf32>
    %201 = vector.broadcast %200 : vector<1x32xf32> to vector<8x32xf32>
    %202 = arith.addf %199, %201 : vector<8x32xf32>
    %c1_79 = arith.constant 1 : index
    %c0_80 = arith.constant 0 : index
    %c0_81 = arith.constant 0 : index
    %203 = vector.load %arg8[%c1_79, %c0_80, %c0_81] : memref<3x64x32xf32, #tpu.memory_space<vmem>>, vector<1x64x32xf32>
    %204 = vector.shape_cast %203 : vector<1x64x32xf32> to vector<64x32xf32>
    %cst_82 = arith.constant dense<0.000000e+00> : vector<8x32xf32>
    %205 = tpu.matmul %196, %204, %cst_82 {dimension_numbers = #tpu.dot_dimension_numbers<[1], [0], [0], [1], [0, 0, 1, 1], [], []>} : vector<8x64xf32>, vector<64x32xf32>, vector<8x32xf32> -> vector<8x32xf32>
    %c1_83 = arith.constant 1 : index
    %c0_84 = arith.constant 0 : index
    %206 = vector.load %arg10[%c1_83, %c0_84] : memref<3x32xf32, #tpu.memory_space<vmem>>, vector<1x32xf32>
    %207 = vector.broadcast %206 : vector<1x32xf32> to vector<8x32xf32>
    %208 = arith.addf %205, %207 : vector<8x32xf32>
    %c2_85 = arith.constant 2 : index
    %c0_86 = arith.constant 0 : index
    %c0_87 = arith.constant 0 : index
    %209 = vector.load %arg8[%c2_85, %c0_86, %c0_87] : memref<3x64x32xf32, #tpu.memory_space<vmem>>, vector<1x64x32xf32>
    %210 = vector.shape_cast %209 : vector<1x64x32xf32> to vector<64x32xf32>
    %cst_88 = arith.constant dense<0.000000e+00> : vector<8x32xf32>
    %211 = tpu.matmul %196, %210, %cst_88 {dimension_numbers = #tpu.dot_dimension_numbers<[1], [0], [0], [1], [0, 0, 1, 1], [], []>} : vector<8x64xf32>, vector<64x32xf32>, vector<8x32xf32> -> vector<8x32xf32>
    %c2_89 = arith.constant 2 : index
    %c0_90 = arith.constant 0 : index
    %212 = vector.load %arg10[%c2_89, %c0_90] : memref<3x32xf32, #tpu.memory_space<vmem>>, vector<1x32xf32>
    %213 = vector.broadcast %212 : vector<1x32xf32> to vector<8x32xf32>
    %214 = arith.addf %211, %213 : vector<8x32xf32>
    %c0_91 = arith.constant 0 : index
    %c0_92 = arith.constant 0 : index
    %c0_93 = arith.constant 0 : index
    %215 = vector.load %arg9[%c0_91, %c0_92, %c0_93] : memref<3x32x32xf32, #tpu.memory_space<vmem>>, vector<1x32x32xf32>
    %216 = vector.shape_cast %215 : vector<1x32x32xf32> to vector<32x32xf32>
    %cst_94 = arith.constant dense<0.000000e+00> : vector<8x32xf32>
    %217 = tpu.matmul %0, %216, %cst_94 {dimension_numbers = #tpu.dot_dimension_numbers<[1], [0], [0], [1], [0, 0, 1, 1], [], []>} : vector<8x32xf32>, vector<32x32xf32>, vector<8x32xf32> -> vector<8x32xf32>
    %c0_95 = arith.constant 0 : index
    %c0_96 = arith.constant 0 : index
    %218 = vector.load %arg11[%c0_95, %c0_96] : memref<3x32xf32, #tpu.memory_space<vmem>>, vector<1x32xf32>
    %219 = vector.broadcast %218 : vector<1x32xf32> to vector<8x32xf32>
    %220 = arith.addf %217, %219 : vector<8x32xf32>
    %c1_97 = arith.constant 1 : index
    %c0_98 = arith.constant 0 : index
    %c0_99 = arith.constant 0 : index
    %221 = vector.load %arg9[%c1_97, %c0_98, %c0_99] : memref<3x32x32xf32, #tpu.memory_space<vmem>>, vector<1x32x32xf32>
    %222 = vector.shape_cast %221 : vector<1x32x32xf32> to vector<32x32xf32>
    %cst_100 = arith.constant dense<0.000000e+00> : vector<8x32xf32>
    %223 = tpu.matmul %0, %222, %cst_100 {dimension_numbers = #tpu.dot_dimension_numbers<[1], [0], [0], [1], [0, 0, 1, 1], [], []>} : vector<8x32xf32>, vector<32x32xf32>, vector<8x32xf32> -> vector<8x32xf32>
    %c1_101 = arith.constant 1 : index
    %c0_102 = arith.constant 0 : index
    %224 = vector.load %arg11[%c1_101, %c0_102] : memref<3x32xf32, #tpu.memory_space<vmem>>, vector<1x32xf32>
    %225 = vector.broadcast %224 : vector<1x32xf32> to vector<8x32xf32>
    %226 = arith.addf %223, %225 : vector<8x32xf32>
    %c2_103 = arith.constant 2 : index
    %c0_104 = arith.constant 0 : index
    %c0_105 = arith.constant 0 : index
    %227 = vector.load %arg9[%c2_103, %c0_104, %c0_105] : memref<3x32x32xf32, #tpu.memory_space<vmem>>, vector<1x32x32xf32>
    %228 = vector.shape_cast %227 : vector<1x32x32xf32> to vector<32x32xf32>
    %cst_106 = arith.constant dense<0.000000e+00> : vector<8x32xf32>
    %229 = tpu.matmul %0, %228, %cst_106 {dimension_numbers = #tpu.dot_dimension_numbers<[1], [0], [0], [1], [0, 0, 1, 1], [], []>} : vector<8x32xf32>, vector<32x32xf32>, vector<8x32xf32> -> vector<8x32xf32>
    %c2_107 = arith.constant 2 : index
    %c0_108 = arith.constant 0 : index
    %230 = vector.load %arg11[%c2_107, %c0_108] : memref<3x32xf32, #tpu.memory_space<vmem>>, vector<1x32xf32>
    %231 = vector.broadcast %230 : vector<1x32xf32> to vector<8x32xf32>
    %232 = arith.addf %229, %231 : vector<8x32xf32>
    %233 = arith.addf %202, %220 : vector<8x32xf32>
    %234 = arith.negf %233 : vector<8x32xf32>
    %235 = math.exp %234 : vector<8x32xf32>
    %cst_109 = arith.constant 1.000000e+00 : f32
    %236 = vector.broadcast %cst_109 : f32 to vector<8x32xf32>
    %237 = arith.addf %236, %235 : vector<8x32xf32>
    %238 = arith.divf %236, %237 : vector<8x32xf32>
    %239 = arith.addf %208, %226 : vector<8x32xf32>
    %240 = arith.negf %239 : vector<8x32xf32>
    %241 = math.exp %240 : vector<8x32xf32>
    %cst_110 = arith.constant 1.000000e+00 : f32
    %242 = vector.broadcast %cst_110 : f32 to vector<8x32xf32>
    %243 = arith.addf %242, %241 : vector<8x32xf32>
    %244 = arith.divf %242, %243 : vector<8x32xf32>
    %245 = arith.mulf %238, %232 : vector<8x32xf32>
    %246 = arith.addf %214, %245 : vector<8x32xf32>
    %247 = math.tanh %246 : vector<8x32xf32>
    %cst_111 = arith.constant 1.000000e+00 : f32
    %248 = vector.broadcast %cst_111 : f32 to vector<8x32xf32>
    %249 = arith.subf %248, %244 : vector<8x32xf32>
    %250 = arith.mulf %249, %247 : vector<8x32xf32>
    %251 = arith.mulf %244, %0 : vector<8x32xf32>
    %252 = arith.addf %250, %251 : vector<8x32xf32>
    %253 = tpu.concatenate %252, %195 in 1 : vector<8x32xf32>, vector<8x32xf32> -> vector<8x64xf32>
    %c0_112 = arith.constant 0 : index
    %c0_113 = arith.constant 0 : index
    %254 = vector.load %arg12[%c0_112, %c0_113] : memref<64x128xf32, #tpu.memory_space<vmem>>, vector<64x128xf32>
    %cst_114 = arith.constant dense<0.000000e+00> : vector<8x128xf32>
    %255 = tpu.matmul %253, %254, %cst_114 {dimension_numbers = #tpu.dot_dimension_numbers<[1], [0], [0], [1], [0, 0, 1, 1], [], []>} : vector<8x64xf32>, vector<64x128xf32>, vector<8x128xf32> -> vector<8x128xf32>
    %c0_115 = arith.constant 0 : index
    %c0_116 = arith.constant 0 : index
    %256 = vector.load %arg13[%c0_115, %c0_116] : memref<1x128xf32, #tpu.memory_space<vmem>>, vector<1x128xf32>
    %257 = vector.broadcast %256 : vector<1x128xf32> to vector<8x128xf32>
    %258 = arith.addf %255, %257 : vector<8x128xf32>
    %cst_117 = arith.constant dense<0xFF800000> : vector<8xf32>
    %259 = vector.multi_reduction <maximumf>, %258, %cst_117 [1] : vector<8x128xf32> to vector<8xf32>
    %260 = vector.shape_cast %259 : vector<8xf32> to vector<8x1xf32>
    %261 = vector.broadcast %260 : vector<8x1xf32> to vector<8x128xf32>
    %262 = arith.subf %258, %261 : vector<8x128xf32>
    %263 = math.exp %262 : vector<8x128xf32>
    %cst_118 = arith.constant dense<0.000000e+00> : vector<8xf32>
    %264 = vector.multi_reduction <add>, %263, %cst_118 [1] : vector<8x128xf32> to vector<8xf32>
    %265 = vector.shape_cast %264 : vector<8xf32> to vector<8x1xf32>
    %266 = math.log %265 : vector<8x1xf32>
    %267 = vector.broadcast %266 : vector<8x1xf32> to vector<8x128xf32>
    %268 = arith.subf %262, %267 : vector<8x128xf32>
    %c0_119 = arith.constant 0 : index
    %c0_120 = arith.constant 0 : index
    %269 = vector.load %arg14[%c0_119, %c0_120] : memref<8x128xf32, #tpu.memory_space<vmem>>, vector<8x128xf32>
    tpu.vector_store %arg14[%c0_119, %c0_120], %268 {strides = array<i32>} : memref<8x128xf32, #tpu.memory_space<vmem>>, vector<8x128xf32>,
    %c0_121 = arith.constant 0 : index
    %c0_122 = arith.constant 0 : index
    %270 = vector.load %arg15[%c0_121, %c0_122] : memref<8x32xf32, #tpu.memory_space<vmem>>, vector<8x32xf32>
    tpu.vector_store %arg15[%c0_121, %c0_122], %252 {strides = array<i32>} : memref<8x32xf32, #tpu.memory_space<vmem>>, vector<8x32xf32>,
    %c0_123 = arith.constant 0 : index
    %c0_124 = arith.constant 0 : index
    %271 = vector.load %arg16[%c0_123, %c0_124] : memref<8x8xf32, #tpu.memory_space<vmem>>, vector<8x8xf32>
    tpu.vector_store %arg16[%c0_123, %c0_124], %162 {strides = array<i32>} : memref<8x8xf32, #tpu.memory_space<vmem>>, vector<8x8xf32>,
    return
  }
}

</mosaic_0001>

<bundles_post_ra>
// kernel: decoder_forward.1
= control target key start
LH: loop header
LB: loop body
LE: loop exit
PB: predicated region body
PF: predicated region fallthrough
CT: control target
= control target key end

     0   :  { %v2158_v0 = vmov 0   ;;  %v2159_v2 = vmov 0.0|0.0   ;;  %vm2160_vm0 = vmmov 0   ;;  %v2161_v8 = vmov 0.0   ;;  %s2666_s0 = inlined_call_operand.vmem [shape: s32[8,1], index: 0, kind: input, shape index: {}]   ;;  %s2667_s5 = inlined_call_operand.vmem [shape: f32[32,32], index: 5, kind: input, shape index: {}]   ;;  %s2668_s3 = inlined_call_operand.vmem [shape: f32[16,32], index: 3, kind: input, shape index: {}]   ;;  %s2669_s2 = inlined_call_operand.vmem [shape: f32[8,8,32], index: 2, kind: input, shape index: {}]   ;;  %s2670_s4 = inlined_call_operand.vmem [shape: f32[32,32], index: 4, kind: input, shape index: {}]   ;;  %s2671_s1 = inlined_call_operand.vmem [shape: f32[8,32], index: 1, kind: input, shape index: {}]   ;;  %s2672_s6 = inlined_call_operand.vmem [shape: f32[1,32], index: 6, kind: input, shape index: {}]   ;;  %s2673_s7 = inlined_call_operand.vmem [shape: f32[1,32], index: 7, kind: input, shape index: {}]   ;;  %s2674_s16 = inlined_call_operand.vmem [shape: f32[8,8], index: 16, kind: output, shape index: {2}]   ;;  %s2675_s8 = inlined_call_operand.vmem [shape: f32[3,64,32], index: 8, kind: input, shape index: {}]   ;;  %s2676_s9 = inlined_call_operand.vmem [shape: f32[3,32,32], index: 9, kind: input, shape index: {}]   ;;  %s2677_s12 = inlined_call_operand.vmem [shape: f32[64,128], index: 12, kind: input, shape index: {}]   ;;  %s2678_s10 = inlined_call_operand.vmem [shape: f32[3,32], index: 10, kind: input, shape index: {}]   ;;  %s2679_s11 = inlined_call_operand.vmem [shape: f32[3,32], index: 11, kind: input, shape index: {}]   ;;  %s2680_s15 = inlined_call_operand.vmem [shape: f32[8,32], index: 15, kind: output, shape index: {1}]   ;;  %s2681_s13 = inlined_call_operand.vmem [shape: f32[1,128], index: 13, kind: input, shape index: {}]   ;;  %s2682_s14 = inlined_call_operand.vmem [shape: f32[8,128], index: 14, kind: output, shape index: {0}]  }
   0x1   :  { %2683 = sst [smem:[#allocation2_spill]] %s2666_s0  ;;  %2115 = vset.pattern.permute.xlu0 %v2158_v0  ;;  %1987 = vmatprep.subr.bf16.mxu1 %v2159_v2  ;;  %v223_v3 = vld [vmem:[%s2667_s5] sm:$0xff]  ;;  %v224_v4 = vld [vmem:[%s2667_s5 + $0x8] sm:$0xff]  ;;  %v225_v6 = vld [vmem:[%s2667_s5 + $0x10] sm:$0xff]  ;;  %vm147_vm1 = vcmask 261120   ;;  %v52_v17 = vlaneseq  ;;  %vm62_vm2 = vcmask 130048  }
   0x2   :  { %s2684_s23 = sld [smem:[#allocation2_spill]]  ;;  %v2265_v5 = vpack.c.bf16 %v224_v4, %v223_v3  ;;  %v226_v7 = vld [vmem:[%s2667_s5 + $0x18] sm:$0xff]  ;;  %1794 = vmatprep.mubr.msk.f32.mxu1 %vm2160_vm0, %v2161_v8  ;;  %1972 = vmatprep.subr.bf16.mxu0 %v2159_v2  ;;  %v60_v9 = vld [vmem:[%s2668_s3] sm:$0xff]  ;;  %v61_v10 = vld [vmem:[%s2668_s3 + $0x8] sm:$0xff]  ;;  %vm903_vm12 = vcmask 64512   ;;  %vm982_vm13 = vcmask 523264  }
   0x3   :  { %1761 = vmatprep.mubr.msk.f32.mxu0 %vm2160_vm0, %v2161_v8  ;;  %v2285_v11 = vpack.c.bf16 %v226_v7, %v225_v6  ;;  %v1973_v12 = vpack.c.bf16 %v61_v10, %v60_v9  ;;  %v2293_v13 = vld [vmem:[%s2669_s2 + $0x8] sm:$0xff]  ;;  %v2306_v14 = vld [vmem:[%s2669_s2 + $0x18] sm:$0xff]  ;;  %v2339_v18 = vand.u32 127, %v52_v17  ;;  %v136_v19 = vld [vmem:[%s2670_s4] sm:$0xff] }
   0x4   :  { %1989 = vmatpush3.bf16.msra.mxu1 %v2265_v5  ;;  %v2319_v15 = vld [vmem:[%s2669_s2 + $0x28] sm:$0xff]  ;;  %v2332_v16 = vld [vmem:[%s2669_s2 + $0x38] sm:$0xff]  ;;  %v138_v23 = vld [vmem:[%s2670_s4 + $0x10] sm:$0xff] }
   0x5   :  { %1990 = vmatprep.subr.bf16.mxu1 %v2159_v2  ;;  %1974 = vmatpush3.bf16.msra.mxu0 %v1973_v12  ;;  %v137_v20 = vld [vmem:[%s2670_s4 + $0x8] sm:$0xff]  ;;  %v139_v24 = vld [vmem:[%s2670_s4 + $0x18] sm:$0xff]  ;;  %v2361_v27 = vld [vmem:[%s2671_s1] sm:$0xff]  ;;  %vm312_vm4 = vcmp.eq.s32.totalorder %v2339_v18, 0  ;;  %vm396_vm5 = vcmp.eq.s32.totalorder %v2339_v18, 1  ;;  %vm480_vm6 = vcmp.eq.s32.totalorder %v2339_v18, 2 }
   0x6   :  { %1975 = vmatprep.subr.bf16.mxu0 %v2159_v2  ;;  %v1976_v22 = vpack.c.bf16 %v137_v20, %v136_v19  ;;  %v1979_v26 = vpack.c.bf16 %v139_v24, %v138_v23  ;;  %v2374_v28 = vld [vmem:[%s2669_s2] sm:$0xff]  ;;  %v2387_v29 = vld [vmem:[%s2669_s2 + $0x10] sm:$0xff]  ;;  %vm564_vm7 = vcmp.eq.s32.totalorder %v2339_v18, 3  ;;  %vm648_vm8 = vcmp.eq.s32.totalorder %v2339_v18, 4  ;;  %s2169_s4 = smov 32  }
   0x7   :  { %v2400_v30 = vld [vmem:[%s2669_s2 + $0x20] sm:$0xff]  ;;  %v2413_v31 = vld [vmem:[%s2669_s2 + $0x30] sm:$0xff]  ;;  %vm732_vm9 = vcmp.eq.s32.totalorder %v2339_v18, 5  ;;  %vm816_vm10 = vcmp.eq.s32.totalorder %v2339_v18, 6  ;;  %vm900_vm11 = vcmp.eq.s32.totalorder %v2339_v18, 7 }
   0x8   :  { %v51_v1 = vld [vmem:[%s2684_s23] sm:$0xff]  ;;  %1992 = vmatpush3.bf16.msra.mxu1 %v2285_v11 }
   0x9   :  { %55 = vperm.xlu0 %2115, %v51_v1   ;;  %1999 = vmatprep.subr.bf16.mxu1 %v2159_v2  ;;  %v1600_v42 = vld [vmem:[%s2672_s6] ss:$0 sm:$0xff] }
   0xa   :  { %v1603_v53 = vld [vmem:[%s2673_s7] ss:$0 sm:$0xff] }
   0xb   :  { %1795 = vmatmul.mubr.msk.f32.vlgmr.msra.gmra.mrb[0].mxu1 %vm147_vm1, %v2293_v13 }
   0xc   :  { %2001 = vmatpush3.bf16.msra.mxu1 %v2265_v5  ;;  %1816 = vmatprep.mubr.msk.f32.mxu1 %vm2160_vm0, %v2161_v8 }
   0xd   :  { %2002 = vmatprep.subr.bf16.mxu1 %v2159_v2 }
  0x10   :  { %2004 = vmatpush3.bf16.msra.mxu1 %v2285_v11 }
  0x11   :  { %2011 = vmatprep.subr.bf16.mxu1 %v2159_v2 }
  0x13   :  { %1817 = vmatmul.mubr.msk.f32.vlgmr.msra.gmra.mrb[2].mxu1 %vm147_vm1, %v2306_v14 }
  0x14   :  { %2013 = vmatpush3.bf16.msra.mxu1 %v2265_v5  ;;  %1838 = vmatprep.mubr.msk.f32.mxu1 %vm2160_vm0, %v2161_v8 }
  0x15   :  { %2014 = vmatprep.subr.bf16.mxu1 %v2159_v2 }
  0x18   :  { %2016 = vmatpush3.bf16.msra.mxu1 %v2285_v11 }
  0x19   :  { %2023 = vmatprep.subr.bf16.mxu1 %v2159_v2 }
  0x1b   :  { %1839 = vmatmul.mubr.msk.f32.vlgmr.msra.gmra.mrb[4].mxu1 %vm147_vm1, %v2319_v15 }
  0x1c   :  { %2025 = vmatpush3.bf16.msra.mxu1 %v2265_v5  ;;  %1860 = vmatprep.mubr.msk.f32.mxu1 %vm2160_vm0, %v2161_v8 }
  0x1d   :  { %2026 = vmatprep.subr.bf16.mxu1 %v2159_v2 }
  0x20   :  { %2028 = vmatpush3.bf16.msra.mxu1 %v2285_v11 }
  0x21   :  { %2041 = vmatprep.subr.bf16.mxu1 %v2159_v2 }
  0x23   :  { %1861 = vmatmul.mubr.msk.f32.vlgmr.msra.gmra.mrb[6].mxu1 %vm147_vm1, %v2332_v16 }
  0x24   :  { %1898 = vmatprep.mubr.msk.f32.mxu1 %vm2160_vm0, %v2161_v8 }
  0x88   :  { %v56_v21 = vpop.permute.xlu0 %55 }
  0x89   :  { %vm57_vm3 = vcmp.eq.s32.totalorder %v2339_v18, %v56_v21 }
  0x8a   :  { %v1598_v25 = vsel %vm57_vm3, 1.0, %v2161_v8 }
  0x8b   :  { %1762 = vmatmul.mubr.msk.f32.vlgmr.msra.gmra.mrb[0].mxu0 %vm62_vm2, %v1598_v25 }
  0x8c   :  { %1977 = vmatpush3.bf16.msra.mxu0 %v1976_v22  ;;  %1772 = vmatprep.mubr.msk.f32.mxu0 %vm2160_vm0, %v2161_v8 }
  0x8d   :  { %1978 = vmatprep.subr.bf16.mxu0 %v2159_v2 }
  0x90   :  { %1980 = vmatpush3.bf16.msra.mxu0 %v1979_v26 }
  0x91   :  { %1981 = vmatprep.subr.bf16.mxu0 %v2159_v2 }
  0x93   :  { %1773 = vmatmul.mubr.msk.f32.vlgmr.msra.gmra.mrb[2].mxu0 %vm147_vm1, %v2361_v27 }
  0x94   :  { %1983 = vmatpush3.bf16.msra.mxu0 %v2265_v5  ;;  %1783 = vmatprep.mubr.msk.f32.mxu0 %vm2160_vm0, %v2161_v8 }
  0x95   :  { %1984 = vmatprep.subr.bf16.mxu0 %v2159_v2 }
  0x98   :  { %1986 = vmatpush3.bf16.msra.mxu0 %v2285_v11 }
  0x99   :  { %1993 = vmatprep.subr.bf16.mxu0 %v2159_v2 }
  0x9b   :  { %1784 = vmatmul.mubr.msk.f32.vlgmr.msra.gmra.mrb[4].mxu0 %vm147_vm1, %v2374_v28 }
  0x9c   :  { %1995 = vmatpush3.bf16.msra.mxu0 %v2265_v5  ;;  %1805 = vmatprep.mubr.msk.f32.mxu0 %vm2160_vm0, %v2161_v8 }
  0x9d   :  { %1996 = vmatprep.subr.bf16.mxu0 %v2159_v2 }
  0xa0   :  { %1998 = vmatpush3.bf16.msra.mxu0 %v2285_v11 }
  0xa1   :  { %2005 = vmatprep.subr.bf16.mxu0 %v2159_v2 }
  0xa3   :  { %1806 = vmatmul.mubr.msk.f32.vlgmr.msra.gmra.mrb[6].mxu0 %vm147_vm1, %v2387_v29 }
  0xa4   :  { %2007 = vmatpush3.bf16.msra.mxu0 %v2265_v5  ;;  %1827 = vmatprep.mubr.msk.f32.mxu0 %vm2160_vm0, %v2161_v8 }
  0xa5   :  { %2008 = vmatprep.subr.bf16.mxu0 %v2159_v2 }
  0xa8   :  { %2010 = vmatpush3.bf16.msra.mxu0 %v2285_v11 }
  0xa9   :  { %2017 = vmatprep.subr.bf16.mxu0 %v2159_v2 }
  0xab   :  { %1828 = vmatmul.mubr.msk.f32.vlgmr.msra.gmra.mrb[8].mxu0 %vm147_vm1, %v2400_v30 }
  0xac   :  { %2019 = vmatpush3.bf16.msra.mxu0 %v2265_v5  ;;  %1849 = vmatprep.mubr.msk.f32.mxu0 %vm2160_vm0, %v2161_v8 }
  0xad   :  { %2020 = vmatprep.subr.bf16.mxu0 %v2159_v2 }
  0xb0   :  { %2022 = vmatpush3.bf16.msra.mxu0 %v2285_v11 }
  0xb1   :  { %2029 = vmatprep.subr.bf16.mxu0 %v2159_v2 }
  0xb3   :  { %1850 = vmatmul.mubr.msk.f32.vlgmr.msra.gmra.mrb[10].mxu0 %vm147_vm1, %v2413_v31 }
  0xb4   :  { %1879 = vmatprep.mubr.msk.f32.mxu0 %vm2160_vm0, %v2161_v8 }
  0xde   :  { %v386_v32 = vpop.f32.mrb[0].mxu1 }
  0xdf   :  { %v1796_v33 = vpop.f32.mrb[1].mxu1 }
  0xe6   :  { %v554_v34 = vpop.f32.mrb[2].mxu1 }
  0xe7   :  { %v1818_v35 = vpop.f32.mrb[3].mxu1 }
  0xee   :  { %v722_v36 = vpop.f32.mrb[4].mxu1 }
  0xef   :  { %v1840_v37 = vpop.f32.mrb[5].mxu1 }
  0xf6   :  { %v890_v38 = vpop.f32.mrb[6].mxu1 }
  0xf7   :  { %v1862_v39 = vpop.f32.mrb[7].mxu1 }
 0x15e   :  { %v2420_v40 = vpop.f32.mrb[0].mxu0 }
 0x15f   :  { %v1763_v41 = vpop.f32.mrb[1].mxu0 }
 0x166   :  { %v217_v43 = vpop.f32.mrb[2].mxu0 }
 0x167   :  { %v218_v44 = vadd.f32 %v1600_v42, %v217_v43  ;;  %v1774_v45 = vpop.f32.mrb[3].mxu0 }
 0x169   :  { %v726_v46 = vadd.f32 %v722_v36, %v218_v44  ;;  %v894_v47 = vadd.f32 %v890_v38, %v218_v44  ;;  %v390_v48 = vadd.f32 %v386_v32, %v218_v44  ;;  %v558_v49 = vadd.f32 %v554_v34, %v218_v44 }
 0x16b   :  { %2124 = vtanh.f32 %v390_v48 }
 0x16c   :  { %2126 = vtanh.f32 %v558_v49 }
 0x16d   :  { %2128 = vtanh.f32 %v726_v46 }
 0x16e   :  { %v296_v50 = vpop.f32.mrb[4].mxu0 }
 0x16f   :  { %v300_v51 = vadd.f32 %v296_v50, %v218_v44  ;;  %v1785_v52 = vpop.f32.mrb[5].mxu0 }
 0x171   :  { %2130 = vtanh.f32 %v300_v51 }
 0x175   :  { %v2125_v55 = vpop.eup %2124 }
 0x176   :  { %v470_v54 = vpop.f32.mrb[6].mxu0  ;;  %v2127_v58 = vpop.eup %2126  ;;  %v392_v59 = vmul.f32 %v2125_v55, %v1603_v53 }
 0x177   :  { %v474_v56 = vadd.f32 %v470_v54, %v218_v44  ;;  %v1807_v57 = vpop.f32.mrb[7].mxu0  ;;  %v2129_v60 = vpop.eup %2128  ;;  %v560_v62 = vmul.f32 %v2127_v58, %v1603_v53 }
 0x178   :  { %v393_v61 = vsel %vm147_vm1, %v392_v59, 0.0  ;;  %v728_v5 = vmul.f32 %v2129_v60, %v1603_v53 }
 0x179   :  { %2132 = vtanh.f32 %v474_v56  ;;  %394 = vadd.xlane.f32.xlu1 %v393_v61  ;;  %v561_v1 = vsel %vm147_vm1, %v560_v62, 0.0 }
 0x17a   :  { %v729_v9 = vsel %vm147_vm1, %v728_v5, 0.0  ;;  %v2163_v5 = vmov 2  }
 0x17b   :  { %v2131_v63 = vpop.eup %2130 }
 0x17c   :  { %v308_v0 = vmul.f32 %v2131_v63, %v1603_v53 }
 0x17d   :  { %562 = vadd.xlane.f32.xlu1 %v561_v1  ;;  %v2162_v1 = vmov 1  }
 0x17e   :  { %v638_v3 = vpop.f32.mrb[8].mxu0  ;;  %v309_v4 = vsel %vm147_vm1, %v308_v0, 0.0  ;;  %2116 = vset.pattern.permute.xlu1 %v2162_v1 }
 0x17f   :  { %v642_v6 = vadd.f32 %v638_v3, %v218_v44  ;;  %310 = vadd.xlane.f32.xlu0 %v309_v4  ;;  %v1829_v7 = vpop.f32.mrb[9].mxu0 }
 0x180   :  { %v2165_v7 = vmov 4  }
 0x181   :  { %2134 = vtanh.f32 %v642_v6  ;;  %730 = vadd.xlane.f32.xlu1 %v729_v9  ;;  %v2164_v6 = vmov 3   ;;  %v2166_v9 = vmov 6  }
 0x182   :  { %2136 = vtanh.f32 %v894_v47 }
 0x183   :  { %v2133_v10 = vpop.eup %2132 }
 0x184   :  { %v476_v11 = vmul.f32 %v2133_v10, %v1603_v53  ;;  %v2167_v10 = vmov 5  }
 0x186   :  { %v806_v12 = vpop.f32.mrb[10].mxu0  ;;  %v477_v17 = vsel %vm147_vm1, %v476_v11, 0.0  ;;  %v2168_v11 = vmov 7  }
 0x187   :  { %v810_v19 = vadd.f32 %v806_v12, %v218_v44  ;;  %478 = vadd.xlane.f32.xlu1 %v477_v17  ;;  %v1851_v20 = vpop.f32.mrb[11].mxu0  ;;  %v969_v12 = vld [vmem:[%s2675_s8] sm:$0xff]  ;;  %v970_v17 = vld [vmem:[%s2675_s8 + $0x8] sm:$0xff] }
 0x188   :  { %v2030_v20 = vpack.c.bf16 %v970_v17, %v969_v12  ;;  %v1634_v17 = vld [vmem:[%s2675_s8 + $0xa0] sm:$0xff] }
 0x189   :  { %2138 = vtanh.f32 %v810_v19  ;;  %v1620_v19 = vld [vmem:[%s2675_s8 + $0x40] sm:$0xff] }
 0x18a   :  { %2031 = vmatpush3.bf16.msra.mxu0 %v2030_v20  ;;  %v1649_v20 = vld [vmem:[%s2676_s9 + $0x48] sm:$0xff] }
 0x18b   :  { %v2135_v21 = vpop.eup %2134  ;;  %2032 = vmatprep.subr.bf16.mxu0 %v2159_v2 }
 0x18c   :  { %v644_v22 = vmul.f32 %v2135_v21, %v1603_v53  ;;  %v2137_v24 = vpop.eup %2136  ;;  %v1621_v21 = vld [vmem:[%s2675_s8 + $0x48] sm:$0xff] }
 0x18d   :  { %v896_v33 = vmul.f32 %v2137_v24, %v1603_v53  ;;  %v2042_v24 = vpack.c.bf16 %v1621_v21, %v1620_v19  ;;  %v1648_v19 = vld [vmem:[%s2676_s9 + $0x40] sm:$0xff] }
 0x18e   :  { %v645_v23 = vsel %vm147_vm1, %v644_v22, 0.0  ;;  %v971_v22 = vld [vmem:[%s2675_s8 + $0x10] sm:$0xff] }
 0x18f   :  { %646 = vadd.xlane.f32.xlu1 %v645_v23  ;;  %v897_v34 = vsel %vm147_vm1, %v896_v33, 0.0  ;;  %v972_v23 = vld [vmem:[%s2675_s8 + $0x18] sm:$0xff]  ;;  %2043 = vmatpush3.bf16.msra.mxu1 %v2042_v24 }
 0x190   :  { %2044 = vmatprep.subr.bf16.mxu1 %v2159_v2  ;;  %v1637_v24 = vld [vmem:[%s2675_s8 + $0xb8] sm:$0xff] }
 0x193   :  { %v2139_v25 = vpop.eup %2138 }
 0x194   :  { %v812_v26 = vmul.f32 %v2139_v25, %v1603_v53  ;;  %v1622_v25 = vld [vmem:[%s2675_s8 + $0x50] sm:$0xff] }
 0x196   :  { %v813_v32 = vsel %vm147_vm1, %v812_v26, 0.0  ;;  %v1623_v26 = vld [vmem:[%s2675_s8 + $0x58] sm:$0xff] }
 0x197   :  { %814 = vadd.xlane.f32.xlu1 %v813_v32  ;;  %v2033_v32 = vpack.c.bf16 %v972_v23, %v971_v22  ;;  %v2045_v33 = vpack.c.bf16 %v1623_v26, %v1622_v25  ;;  %v1636_v22 = vld [vmem:[%s2675_s8 + $0xb0] sm:$0xff]  ;;  %v2078_v23 = vpack.c.bf16 %v1649_v20, %v1648_v19  ;;  %v1651_v26 = vld [vmem:[%s2676_s9 + $0x58] sm:$0xff] }
 0x198   :  { %v1650_v25 = vld [vmem:[%s2676_s9 + $0x50] sm:$0xff] }
 0x199   :  { %2034 = vmatpush3.bf16.msra.mxu0 %v2033_v32  ;;  %2046 = vmatpush3.bf16.msra.mxu1 %v2045_v33  ;;  %v2063_v32 = vpack.c.bf16 %v1637_v24, %v1636_v22  ;;  %v2081_v33 = vpack.c.bf16 %v1651_v26, %v1650_v25 }
 0x19a   :  { %2035 = vmatprep.subr.bf16.mxu0 %v2159_v2  ;;  %2047 = vmatprep.subr.bf16.mxu1 %v2159_v2 }
 0x19b   :  { %898 = vadd.xlane.f32.xlu1 %v897_v34  ;;  %v973_v34 = vld [vmem:[%s2675_s8 + $0x20] sm:$0xff] }
 0x206   :  { %v395_v35 = vpop.xlane.xlu1 %394 }
 0x207   :  { %v397_v42 = vsel %vm396_vm5, %v395_v35, 0.0  ;;  %v974_v35 = vld [vmem:[%s2675_s8 + $0x28] sm:$0xff] }
 0x20a   :  { %v563_v36 = vpop.xlane.xlu1 %562 }
 0x20b   :  { %v565_v47 = vsel %vm564_vm7, %v563_v36, 0.0  ;;  %v1624_v36 = vld [vmem:[%s2675_s8 + $0x60] sm:$0xff] }
 0x20c   :  { %v311_v38 = vpop.xlane.xlu0 %310 }
 0x20d   :  { %v313_v41 = vsel %vm312_vm4, %v311_v38, 0.0  ;;  %v2036_v38 = vpack.c.bf16 %v974_v35, %v973_v34  ;;  %v1224_v34 = vld [vmem:[%s2676_s9] sm:$0xff]  ;;  %v1225_v35 = vld [vmem:[%s2676_s9 + $0x8] sm:$0xff] }
 0x20e   :  { %v731_v37 = vpop.xlane.xlu1 %730  ;;  %v398_v44 = vadd.f32 %v397_v42, %v313_v41  ;;  %v975_v41 = vld [vmem:[%s2675_s8 + $0x30] sm:$0xff]  ;;  %v976_v42 = vld [vmem:[%s2675_s8 + $0x38] sm:$0xff] }
 0x20f   :  { %v733_v52 = vsel %vm732_vm9, %v731_v37, 0.0  ;;  %v1625_v37 = vld [vmem:[%s2675_s8 + $0x68] sm:$0xff]  ;;  %2037 = vmatpush3.bf16.msra.mxu0 %v2036_v38  ;;  %v1227_v38 = vld [vmem:[%s2676_s9 + $0x18] sm:$0xff] }
 0x210   :  { %2038 = vmatprep.subr.bf16.mxu0 %v2159_v2 }
 0x214   :  { %v479_v39 = vpop.xlane.xlu1 %478 }
 0x215   :  { %v481_v43 = vsel %vm480_vm6, %v479_v39, 0.0  ;;  %v2048_v39 = vpack.c.bf16 %v1625_v37, %v1624_v36  ;;  %v2066_v36 = vpack.c.bf16 %v1225_v35, %v1224_v34  ;;  %v1226_v37 = vld [vmem:[%s2676_s9 + $0x10] sm:$0xff] }
 0x216   :  { %v482_v45 = vadd.f32 %v481_v43, %v398_v44  ;;  %v1626_v43 = vld [vmem:[%s2675_s8 + $0x70] sm:$0xff]  ;;  %v1627_v44 = vld [vmem:[%s2675_s8 + $0x78] sm:$0xff] }
 0x217   :  { %2049 = vmatpush3.bf16.msra.mxu1 %v2048_v39  ;;  %v2069_v39 = vpack.c.bf16 %v1227_v38, %v1226_v37 }
 0x218   :  { %v566_v49 = vadd.f32 %v565_v47, %v482_v45  ;;  %v2039_v45 = vpack.c.bf16 %v976_v42, %v975_v41  ;;  %2050 = vmatprep.subr.bf16.mxu1 %v2159_v2  ;;  %v1485_v41 = vld [vmem:[%s2677_s12] sm:$0xff]  ;;  %v1486_v42 = vld [vmem:[%s2677_s12 + $0x8] sm:$0xff] }
 0x21a   :  { %2040 = vmatpush3.bf16.msra.mxu0 %v2039_v45 }
 0x21b   :  { %2053 = vmatprep.subr.bf16.mxu0 %v2159_v2 }
 0x21c   :  { %v647_v46 = vpop.xlane.xlu1 %646 }
 0x21d   :  { %v649_v48 = vsel %vm648_vm8, %v647_v46, 0.0  ;;  %v2051_v46 = vpack.c.bf16 %v1627_v44, %v1626_v43  ;;  %v2084_v43 = vpack.c.bf16 %v1486_v42, %v1485_v41  ;;  %v1487_v44 = vld [vmem:[%s2677_s12 + $0x10] sm:$0xff] }
 0x21e   :  { %v650_v50 = vadd.f32 %v649_v48, %v566_v49 }
 0x21f   :  { %2052 = vmatpush3.bf16.msra.mxu1 %v2051_v46  ;;  %v1489_v46 = vld [vmem:[%s2677_s12 + $0x20] sm:$0xff] }
 0x220   :  { %v734_v54 = vadd.f32 %v733_v52, %v650_v50  ;;  %2071 = vmatprep.subr.bf16.mxu1 %v2159_v2 }
 0x224   :  { %v815_v51 = vpop.xlane.xlu1 %814 }
 0x225   :  { %v817_v53 = vsel %vm816_vm10, %v815_v51, 0.0 }
 0x226   :  { %v818_v55 = vadd.f32 %v817_v53, %v734_v54 }
 0x228   :  { %v899_v56 = vpop.xlane.xlu1 %898 }
 0x229   :  { %v901_v57 = vsel %vm900_vm11, %v899_v56, 0.0 }
 0x22a   :  { %v902_v58 = vadd.f32 %v901_v57, %v818_v55 }
 0x22c   :  { %v904_v59 = vsel %vm903_vm12, %v902_v58, -inf }
 0x22d   :  { %905 = vmax.xlane.f32.xlu1 %v904_v59 }
 0x2ba   :  { %v906_v60 = vpop.xlane.xlu1 %905 }
 0x2bb   :  { %v907_v61 = vsub.f32 %v902_v58, %v906_v60 }
 0x2bd   :  { %v908_v62 = vmul.f32 1.442695, %v907_v61 }
 0x2bf   :  { %2140 = vpow2.f32 %v908_v62 }
 0x2c9   :  { %v2141_v63 = vpop.eup %2140 }
 0x2ca   :  { %v910_v0 = vsel %vm903_vm12, %v2141_v63, 0.0 }
 0x2cb   :  { %911 = vadd.xlane.f32.xlu1 %v910_v0 }
 0x358   :  { %v912_v3 = vpop.xlane.xlu1 %911 }
 0x359   :  { %2142 = vrcp.f32 %v912_v3 }
 0x363   :  { %v2143_v18 = vpop.eup %2142 }
 0x364   :  { %v914_v4 = vmul.f32 %v2143_v18, %v2141_v63 }
 0x366   :  { %1585 = vst.msk [vmem:[%s2674_s16] sm:$0xff] %vm903_vm12, %v914_v4  ;;  %923 = vperm.xlu1 %2116, %v914_v4   ;;  %917 = vperm.xlu0 %2115, %v914_v4  }
 0x36a   :  { %2117 = vset.pattern.permute.xlu1 %v2163_v5  ;;  %2118 = vset.pattern.permute.xlu0 %v2164_v6  ;;  %v1633_v6 = vld [vmem:[%s2675_s8 + $0x98] sm:$0xff] }
 0x36b   :  { %929 = vperm.xlu1 %2117, %v914_v4   ;;  %935 = vperm.xlu0 %2118, %v914_v4  }
 0x36f   :  { %2119 = vset.pattern.permute.xlu1 %v2165_v7  ;;  %2121 = vset.pattern.permute.xlu0 %v2166_v9  ;;  %v1644_v7 = vld [vmem:[%s2676_s9 + $0x30] sm:$0xff]  ;;  %v1645_v9 = vld [vmem:[%s2676_s9 + $0x38] sm:$0xff] }
 0x370   :  { %941 = vperm.xlu1 %2119, %v914_v4   ;;  %953 = vperm.xlu0 %2121, %v914_v4   ;;  %v2075_v12 = vpack.c.bf16 %v1645_v9, %v1644_v7 }
 0x374   :  { %2120 = vset.pattern.permute.xlu1 %v2167_v10  ;;  %2123 = vset.pattern.permute.xlu0 %v2168_v11 }
 0x375   :  { %947 = vperm.xlu1 %2120, %v914_v4  }
 0x379   :  { %2122 = vset.pattern.permute.xlu1 %v2168_v11 }
 0x37a   :  { %959 = vperm.xlu1 %2122, %v914_v4   ;;  %v1632_v4 = vld [vmem:[%s2675_s8 + $0x90] sm:$0xff] }
 0x37b   :  { %v2057_v11 = vpack.c.bf16 %v1633_v6, %v1632_v4 }
 0x3e5   :  { %v924_v47 = vpop.permute.xlu1 %923  ;;  %v918_v48 = vpop.permute.xlu0 %917 }
 0x3e6   :  { %v926_v49 = vmul.f32 %v2293_v13, %v924_v47  ;;  %v920_v50 = vmul.f32 %v918_v48, %v2374_v28  ;;  %v1490_v47 = vld [vmem:[%s2677_s12 + $0x28] sm:$0xff] }
 0x3e7   :  { %v2090_v48 = vpack.c.bf16 %v1490_v47, %v1489_v46 }
 0x3e8   :  { %v927_v52 = vadd.f32 %v926_v49, %v920_v50  ;;  %v1491_v49 = vld [vmem:[%s2677_s12 + $0x30] sm:$0xff]  ;;  %v1492_v50 = vld [vmem:[%s2677_s12 + $0x38] sm:$0xff] }
 0x3ea   :  { %v930_v51 = vpop.permute.xlu1 %929  ;;  %v936_v54 = vpop.permute.xlu0 %935 }
 0x3eb   :  { %v932_v53 = vmul.f32 %v2387_v29, %v930_v51  ;;  %v938_v56 = vmul.f32 %v2306_v14, %v936_v54  ;;  %v1630_v14 = vld [vmem:[%s2675_s8 + $0x80] sm:$0xff]  ;;  %v2093_v51 = vpack.c.bf16 %v1492_v50, %v1491_v49 }
 0x3ed   :  { %v933_v55 = vadd.f32 %v932_v53, %v927_v52 }
 0x3ef   :  { %v942_v57 = vpop.permute.xlu1 %941  ;;  %v939_v58 = vadd.f32 %v938_v56, %v933_v55  ;;  %v954_v60 = vpop.permute.xlu0 %953 }
 0x3f0   :  { %v944_v59 = vmul.f32 %v2400_v30, %v942_v57  ;;  %v956_v13 = vmul.f32 %v2413_v31, %v954_v60  ;;  %v1631_v30 = vld [vmem:[%s2675_s8 + $0x88] sm:$0xff]  ;;  %v1628_v60 = vld [vmem:[%s2678_s10 + $0x1] ss:$0 sm:$0xff] }
 0x3f1   :  { %v1643_v31 = vld [vmem:[%s2676_s9 + $0x28] sm:$0xff] }
 0x3f2   :  { %v945_v62 = vadd.f32 %v944_v59, %v939_v58  ;;  %v1618_v58 = vld [vmem:[%s2678_s10] ss:$0 sm:$0xff] }
 0x3f3   :  { %v1640_v59 = vld [vmem:[%s2679_s11] ss:$0 sm:$0xff] }
 0x3f4   :  { %v948_v61 = vpop.permute.xlu1 %947 }
 0x3f5   :  { %v950_v63 = vmul.f32 %v2319_v15, %v948_v61  ;;  %v1642_v15 = vld [vmem:[%s2676_s9 + $0x20] sm:$0xff]  ;;  %v2095_v61 = vadd.f32 %v1640_v59, %v1618_v58 }
 0x3f6   :  { %v2072_v18 = vpack.c.bf16 %v1643_v31, %v1642_v15  ;;  %v1652_v15 = vld [vmem:[%s2679_s11 + $0x2] ss:$0 sm:$0xff] }
 0x3f7   :  { %v951_v28 = vadd.f32 %v950_v63, %v945_v62 }
 0x3f9   :  { %v960_v0 = vpop.permute.xlu1 %959  ;;  %v957_v1 = vadd.f32 %v956_v13, %v951_v28 }
 0x3fa   :  { %v962_v29 = vmul.f32 %v2332_v16, %v960_v0  ;;  %v2054_v16 = vpack.c.bf16 %v1631_v30, %v1630_v14 }
 0x3fc   :  { %v963_v3 = vadd.f32 %v962_v29, %v957_v1 }
 0x3fe   :  { %965 = vrot.lane.b32.xlu1 %v963_v3, %s2169_s4 }
 0x470   :  { %v2529_v5 = vpop.permute.xlu1 %965 }
 0x471   :  { %v968_v10 = vsel %vm147_vm1, %v2420_v40, %v2529_v5  ;;  %v1635_v40 = vld [vmem:[%s2675_s8 + $0xa8] sm:$0xff] }
 0x472   :  { %1880 = vmatmul.mubr.msk.f32.vlgmr.msra.gmra.mrb[12].mxu0 %vm982_vm13, %v968_v10  ;;  %1899 = vmatmul.mubr.msk.f32.vlgmr.msra.gmra.mrb[8].mxu1 %vm982_vm13, %v968_v10  ;;  %v2060_v21 = vpack.c.bf16 %v1635_v40, %v1634_v17 }
 0x473   :  { %2055 = vmatpush3.bf16.msra.mxu0 %v2054_v16  ;;  %2073 = vmatpush3.bf16.msra.mxu1 %v2072_v18  ;;  %v1638_v18 = vld [vmem:[%s2678_s10 + $0x2] ss:$0 sm:$0xff] }
 0x474   :  { %2056 = vmatprep.subr.bf16.mxu0 %v2159_v2  ;;  %2074 = vmatprep.subr.bf16.mxu1 %v2159_v2 }
 0x475   :  { %1939 = vmatprep.mubr.msk.f32.mxu1 %vm2160_vm0, %v2161_v8  ;;  %1917 = vmatprep.mubr.msk.f32.mxu0 %vm2160_vm0, %v2161_v8 }
 0x477   :  { %2058 = vmatpush3.bf16.msra.mxu0 %v2057_v11  ;;  %2076 = vmatpush3.bf16.msra.mxu1 %v2075_v12 }
 0x478   :  { %2059 = vmatprep.subr.bf16.mxu0 %v2159_v2  ;;  %2077 = vmatprep.subr.bf16.mxu1 %v2159_v2 }
 0x47a   :  { %1940 = vmatmul.mubr.msk.f32.vlgmr.msra.gmra.mrb[8].mxu1 %vm147_vm1, %v2361_v27 }
 0x47b   :  { %2061 = vmatpush3.bf16.msra.mxu0 %v2060_v21  ;;  %2079 = vmatpush3.bf16.msra.mxu1 %v2078_v23  ;;  %v1656_v21 = vld [vmem:[%s2681_s13] ss:$0 sm:$0xff] }
 0x47c   :  { %2062 = vmatprep.subr.bf16.mxu0 %v2159_v2  ;;  %2080 = vmatprep.subr.bf16.mxu1 %v2159_v2 }
 0x47d   :  { %1950 = vmatprep.mubr.msk.f32.mxu1 %vm2160_vm0, %v2161_v8 }
 0x47f   :  { %2064 = vmatpush3.bf16.msra.mxu0 %v2063_v32  ;;  %2082 = vmatpush3.bf16.msra.mxu1 %v2081_v33 }
 0x480   :  { %2065 = vmatprep.subr.bf16.mxu0 %v2159_v2  ;;  %2083 = vmatprep.subr.bf16.mxu1 %v2159_v2 }
 0x482   :  { %1918 = vmatmul.mubr.msk.f32.vlgmr.msra.gmra.mrb[14].mxu0 %vm982_vm13, %v968_v10  ;;  %1951 = vmatmul.mubr.msk.f32.vlgmr.msra.gmra.mrb[10].mxu1 %vm147_vm1, %v2361_v27 }
 0x483   :  { %2067 = vmatpush3.bf16.msra.mxu0 %v2066_v36  ;;  %1928 = vmatprep.mubr.msk.f32.mxu0 %vm2160_vm0, %v2161_v8 }
 0x484   :  { %2068 = vmatprep.subr.bf16.mxu0 %v2159_v2  ;;  %1969 = vmatprep.mubr.msk.f32.mxu1 %vm2160_vm0, %v2161_v8  ;;  %v1488_v8 = vld [vmem:[%s2677_s12 + $0x18] sm:$0xff] }
 0x485   :  { %2085 = vmatpush3.bf16.msra.mxu1 %v2084_v43  ;;  %v2087_v45 = vpack.c.bf16 %v1488_v8, %v1487_v44 }
 0x486   :  { %2086 = vmatprep.subr.bf16.mxu1 %v2159_v2 }
 0x487   :  { %2070 = vmatpush3.bf16.msra.mxu0 %v2069_v39 }
 0x489   :  { %2088 = vmatpush3.bf16.msra.mxu1 %v2087_v45 }
 0x48a   :  { %1929 = vmatmul.mubr.msk.f32.vlgmr.msra.gmra.mrb[12].mxu0 %vm147_vm1, %v2361_v27  ;;  %2089 = vmatprep.subr.bf16.mxu1 %v2159_v2 }
 0x48d   :  { %2091 = vmatpush3.bf16.msra.mxu1 %v2090_v48 }
 0x48e   :  { %2092 = vmatprep.subr.bf16.mxu1 %v2159_v2  ;;  %v1646_v2 = vld [vmem:[%s2679_s11 + $0x1] ss:$0 sm:$0xff] }
 0x48f   :  { %v2097_v62 = vadd.f32 %v1646_v2, %v1628_v60 }
 0x491   :  { %2094 = vmatpush3.bf16.msra.mxu1 %v2093_v51 }
 0x54d   :  { %v1379_v52 = vpop.f32.mrb[8].mxu1 }
 0x54e   :  { %v1941_v53 = vpop.f32.mrb[9].mxu1  ;;  %v2098_v1 = vadd.f32 %v2097_v62, %v1379_v52 }
 0x550   :  { %v1655_v29 = vmul.f32 -1.442695, %v2098_v1 }
 0x555   :  { %v1220_v54 = vpop.f32.mrb[14].mxu0  ;;  %v1459_v55 = vpop.f32.mrb[10].mxu1 }
 0x556   :  { %v1919_v56 = vpop.f32.mrb[15].mxu0  ;;  %v1952_v57 = vpop.f32.mrb[11].mxu1  ;;  %v1460_v16 = vadd.f32 %v1652_v15, %v1459_v55  ;;  %v1221_v6 = vadd.f32 %v1638_v18, %v1220_v54 }
 0x55d   :  { %v1299_v63 = vpop.f32.mrb[12].mxu0 }
 0x55e   :  { %v2096_v13 = vadd.f32 %v2095_v61, %v1299_v63  ;;  %v1930_v28 = vpop.f32.mrb[13].mxu0 }
 0x560   :  { %v1654_v0 = vmul.f32 -1.442695, %v2096_v13 }
 0x562   :  { %2144 = vpow2.f32 %v1654_v0 }
 0x563   :  { %2146 = vpow2.f32 %v1655_v29 }
 0x56c   :  { %v2145_v3 = vpop.eup %2144 }
 0x56d   :  { %v1467_v14 = vadd.f32 1.0, %v2145_v3  ;;  %v2147_v30 = vpop.eup %2146 }
 0x56e   :  { %v1474_v31 = vadd.f32 1.0, %v2147_v30 }
 0x56f   :  { %2148 = vrcp.f32 %v1467_v14 }
 0x570   :  { %2150 = vrcp.f32 %v1474_v31 }
 0x579   :  { %v2149_v4 = vpop.eup %2148 }
 0x57a   :  { %v1477_v7 = vmul.f32 %v2149_v4, %v1460_v16  ;;  %v2151_v10 = vpop.eup %2150 }
 0x57b   :  { %v1480_v11 = vsub.f32 1.0, %v2151_v10  ;;  %v1482_v40 = vmul.f32 %v2151_v10, %v2361_v27 }
 0x57c   :  { %v1478_v9 = vadd.f32 %v1477_v7, %v1221_v6 }
 0x57e   :  { %2152 = vtanh.f32 %v1478_v9 }
 0x588   :  { %v2153_v12 = vpop.eup %2152 }
 0x589   :  { %v1481_v17 = vmul.f32 %v2153_v12, %v1480_v11 }
 0x58b   :  { %v1483_v19 = vadd.f32 %v1482_v40, %v1481_v17 }
 0x58d   :  { %v1484_v20 = vsel %vm147_vm1, %v1483_v19, %v2529_v5  ;;  %1584 = vst.msk [vmem:[%s2680_s15] sm:$0xff] %vm147_vm1, %v1483_v19 }
 0x58e   :  { %1970 = vmatmul.mubr.msk.f32.vlgmr.msra.gmra.mrb[12].mxu1 %vm982_vm13, %v1484_v20 }
 0x661   :  { %v1569_v22 = vpop.f32.mrb[12].mxu1 }
 0x662   :  { %v1570_v23 = vadd.f32 %v1656_v21, %v1569_v22  ;;  %v1971_v24 = vpop.f32.mrb[13].mxu1 }
 0x664   :  { %1573 = vmax.xlane.f32.xlu0 %v1570_v23 }
 0x6f1   :  { %v1574_v27 = vpop.xlane.xlu0 %1573 }
 0x6f2   :  { %v1575_v25 = vsub.f32 %v1570_v23, %v1574_v27 }
 0x6f4   :  { %v1576_v26 = vmul.f32 1.442695, %v1575_v25 }
 0x6f6   :  { %2154 = vpow2.f32 %v1576_v26 }
 0x700   :  { %v2155_v5 = vpop.eup %2154 }
 0x701   :  { %1578 = vadd.xlane.f32.xlu1 %v2155_v5 }
 0x78e   :  { %v1579_v32 = vpop.xlane.xlu1 %1578 }
 0x78f   :  { %2156 = vlog2.f32 %v1579_v32 }
 0x799   :  { %v2157_v33 = vpop.eup %2156 }
 0x79a   :  { %v1581_v34 = vmul.f32 0.6931472, %v2157_v33 }
 0x79c   :  { %v1582_v35 = vsub.f32 %v1575_v25, %v1581_v34 }
 0x79e   :  { %1583 = vst [vmem:[%s2682_s14] sm:$0xff] %v1582_v35 }

</bundles_post_ra>
